<compile_context>
chip_gen: v7x
topology: tpu7x:2x2x1
jax: 0.10.0
libtpu: 0.0.40
codegen_flags: <defaults>
</compile_context>

<pallas_src>
import functools

import jax
import jax.numpy as jnp
from jax import lax
from jax.experimental import pallas as pl
from jax.experimental.pallas import tpu as pltpu

_NEG = -1e30
_POS = 1e30


def _retrieval_loss_kernel(xi_ref, xj_ref, sqi_ref, sqj_ref, lab_i_ref, lab_j_ref,
                           ce_ref, tri_ref, ap_ref, an_ref,
                           *, margin, n_total):
    j = pl.program_id(1)
    nj = pl.num_programs(1)
    tm, c = xi_ref.shape
    tn = xj_ref.shape[0]

    lab_i = lab_i_ref[...]                       # (TM, 1) int32
    lab_j = lab_j_ref[...]                       # (1, TN) int32

    # Gram tile on the MXU: operands stay in the input dtype, f32 accumulation.
    gram = lax.dot_general(xi_ref[...], xj_ref[...], (((1,), (1,)), ((), ())),
                           preferred_element_type=jnp.float32)          # (TM, TN)

    # Mine on h = 0.5*||xj||^2 - <xi, xj>.  For a fixed row i,
    # dist^2 = ||xi||^2 + 2*h is a positive-slope affine map of h, so the
    # arg-max over positives / arg-min over negatives is unchanged; ||xi||^2,
    # the *2 and clamp+sqrt are applied only to the selected (TM,1) values.
    h = 0.5 * sqj_ref[...] - gram                                        # (TM, TN)

    col_ids = j * tn + lax.broadcasted_iota(jnp.int32, (1, tn), 1)       # (1, TN)
    col_valid = col_ids < n_total
    same_lab = lab_i == lab_j                                            # (TM, TN)
    pos_mask = same_lab & col_valid
    neg_mask = jnp.logical_not(same_lab) & col_valid

    @pl.when(j == 0)
    def _prologue():
        ap_ref[...] = jnp.full((tm, 1), _NEG, jnp.float32)
        an_ref[...] = jnp.full((tm, 1), _POS, jnp.float32)
        # Per-row cross entropy: logsumexp(x) - x[label].  Done once per row
        # tile at j == 0 (xi resident) so the EUP/XLU work overlaps the j == 1
        # xj DMA instead of stretching the row-tile epilogue.  f32 cast of xi
        # happens only here (hot loop keeps the input dtype for the MXU).
        xi = xi_ref[...].astype(jnp.float32)
        row_max = jnp.max(xi, axis=1, keepdims=True)
        lse = jnp.log(jnp.sum(jnp.exp(xi - row_max), axis=1, keepdims=True)) + row_max
        cls_iota = lax.broadcasted_iota(jnp.int32, (tm, c), 1)
        picked = jnp.sum(jnp.where(cls_iota == lab_i, xi, 0.0),
                         axis=1, keepdims=True)
        ce_ref[...] = lse - picked

    ap_ref[...] = jnp.maximum(
        ap_ref[...],
        jnp.max(jnp.where(pos_mask, h, _NEG), axis=1, keepdims=True))
    an_ref[...] = jnp.minimum(
        an_ref[...],
        jnp.min(jnp.where(neg_mask, h, _POS), axis=1, keepdims=True))

    @pl.when(j == nj - 1)
    def _finalize():
        sq_i = sqi_ref[...]                                              # (TM, 1) f32
        d_ap = jnp.sqrt(jnp.maximum(sq_i + 2.0 * ap_ref[...], 1e-12))
        d_an = jnp.sqrt(jnp.maximum(sq_i + 2.0 * an_ref[...], 1e-12))
        tri_ref[...] = jnp.maximum(d_ap - d_an + margin, 0.0)


def _vmem_limit_bytes():
    """Generation-aware scoped-VMEM request (v7x: 64 MiB physical -> ~48 MiB;
    v5e/v6e: 128 MiB physical -> ~96 MiB)."""
    cap = 64 * 1024 * 1024                      # safe default (v7x per-TC physical)
    try:
        cap = int(getattr(pltpu.get_tpu_info(), "vmem_capacity_bytes", cap))
    except Exception:
        pass
    return min(cap * 3 // 4, 100 * 1024 * 1024)


def _pick_tiles(n, c, itemsize, budget):
    """Pick (TM, TN).  Larger TM first (it is the xj-HBM-traffic lever).
    Candidates are multiples of 8 / 128; tiles capped at n collapse to the
    full array dim, which is always layout-legal."""
    def est(tm, tn, bufs=2):
        stream = bufs * (tm + tn) * c * itemsize    # (double-)buffered xi / xj tiles
        inter = 3 * tm * tn * 4                     # gram / h / masked f32 temps
        small = bufs * 4 * (tm + tn) * 4 + 8 * tm * 4
        return stream + inter + small

    if n <= 512 and est(n, n, bufs=1) <= budget:
        return n, n                                  # one-shot: grid (1, 1)

    for tm in (512, 384, 256, 128):
        tm_eff = n if tm >= n else tm                # full-dim block if tile >= n
        for tn in (512, 256, 128):
            tn_eff = n if tn >= n else tn
            if est(tm_eff, tn_eff) <= budget:
                return tm_eff, tn_eff
    # TODO(synk): very large C needs an in-kernel C-chunked gram accumulation;
    # fall back to the smallest tiles and let the compiler's VMEM limit decide.
    return (n if n < 128 else 128), (n if n < 128 else 128)


def retrieval_loss(inputs, labels, lamb=0.5, margin=0.3, *, tiles=None):
    n, c = inputs.shape
    lab = labels.astype(jnp.int32)
    lab_col = lab.reshape(n, 1)
    lab_row = lab.reshape(1, n)

    # O(N*C) one-time precompute: exact-f32 squared norms, passed as row and
    # column views so the kernel never recomputes ||x||^2 (and never casts xj).
    xf = inputs.astype(jnp.float32)
    sq = jnp.sum(xf * xf, axis=1)
    sq_col = sq.reshape(n, 1)
    sq_row = sq.reshape(1, n)

    vmem_limit = _vmem_limit_bytes()
    if tiles is None:
        tm, tn = _pick_tiles(n, c, jnp.dtype(inputs.dtype).itemsize,
                             budget=int(vmem_limit * 0.8))
    else:
        tm, tn = tiles
    grid = (pl.cdiv(n, tm), pl.cdiv(n, tn))

    kernel = functools.partial(_retrieval_loss_kernel,
                               margin=float(margin), n_total=n)

    ce_rows, tri_rows = pl.pallas_call(
        kernel,
        out_shape=(jax.ShapeDtypeStruct((n, 1), jnp.float32),
                   jax.ShapeDtypeStruct((n, 1), jnp.float32)),
        grid_spec=pltpu.PrefetchScalarGridSpec(
            num_scalar_prefetch=0,
            grid=grid,
            in_specs=[
                pl.BlockSpec((tm, c), lambda i, j: (i, 0)),   # row tile of x
                pl.BlockSpec((tn, c), lambda i, j: (j, 0)),   # col tile of x (streamed)
                pl.BlockSpec((tm, 1), lambda i, j: (i, 0)),   # ||x||^2 (row view)
                pl.BlockSpec((1, tn), lambda i, j: (0, j)),   # ||x||^2 (col view)
                pl.BlockSpec((tm, 1), lambda i, j: (i, 0)),   # labels (row view)
                pl.BlockSpec((1, tn), lambda i, j: (0, j)),   # labels (col view)
            ],
            out_specs=[
                pl.BlockSpec((tm, 1), lambda i, j: (i, 0)),   # per-row CE
                pl.BlockSpec((tm, 1), lambda i, j: (i, 0)),   # per-row triplet hinge
            ],
            scratch_shapes=[
                pltpu.VMEM((tm, 1), jnp.float32),             # running max h (positives)
                pltpu.VMEM((tm, 1), jnp.float32),             # running min h (negatives)
            ],
        ),
        compiler_params=pltpu.CompilerParams(
            dimension_semantics=("parallel", "arbitrary"),
            vmem_limit_bytes=vmem_limit,
        ),
    )(inputs, inputs, sq_col, sq_row, lab_col, lab_row)

    # Tiny O(N) epilogue: mean over rows + lamb mix (keeps lamb a free param).
    return lamb * jnp.mean(ce_rows) + (1.0 - lamb) * jnp.mean(tri_rows)


def _reference_loss(x, labels, lamb=0.5, margin=0.3):
    """Pure-JAX mirror of the PyTorch module for a correctness check."""
    xf = x.astype(jnp.float32)
    n = xf.shape[0]
    logp = jax.nn.log_softmax(xf, axis=-1)
    ce = -jnp.mean(logp[jnp.arange(n), labels])
    sq = jnp.sum(xf * xf, axis=1, keepdims=True)
    gram = jnp.einsum("ic,jc->ij", xf, xf, precision=jax.lax.Precision.HIGHEST)
    dist = jnp.sqrt(jnp.maximum(sq + sq.T - 2.0 * gram, 1e-12))
    same = labels[:, None] == labels[None, :]
    d_ap = jnp.max(jnp.where(same, dist, -jnp.inf), axis=1)
    d_an = jnp.min(jnp.where(same, jnp.inf, dist), axis=1)
    tri = jnp.mean(jnp.maximum(d_ap - d_an + margin, 0.0))
    return lamb * ce + (1.0 - lamb) * tri


if __name__ == "__main__":
    key = jax.random.PRNGKey(0)

    # Small shape consistent with the module: batch of 8 rows, 32 classes /
    # 32-dim embedding, 4 identities x 2 samples (positives + negatives exist).
    N, C = 8, 32
    x = jax.random.normal(key, (N, C), dtype=jnp.float32)
    labels = jnp.array([0, 0, 1, 1, 2, 2, 3, 3], dtype=jnp.int32)

    loss = retrieval_loss(x, labels)
    jax.block_until_ready(loss)
    ref = _reference_loss(x, labels)
    assert bool(jnp.isfinite(loss)), float(loss)
    assert abs(float(loss) - float(ref)) < 1e-2, (float(loss), float(ref))

    # Exercise the tiled multi-step mining path (partial row & column tiles,
    # running max/min scratch, column-validity masking).
    N2, C2 = 200, 64
    k1, _ = jax.random.split(key)
    x2 = jax.random.normal(k1, (N2, C2), dtype=jnp.float32)
    labels2 = jnp.arange(N2, dtype=jnp.int32) % 50          # 50 ids x 4 samples
    loss2 = retrieval_loss(x2, labels2, tiles=(128, 128))
    jax.block_until_ready(loss2)
    ref2 = _reference_loss(x2, labels2)
    assert bool(jnp.isfinite(loss2)), float(loss2)
    assert abs(float(loss2) - float(ref2)) < 1e-2, (float(loss2), float(ref2))

    print("KERNEL_OK")
</pallas_src>

<mosaic_0001>
module attributes {stable_mosaic.version = 11 : i64} {
  func.func @_retrieval_loss_kernel(%arg0: i32, %arg1: i32, %arg2: memref<8x32xf32, #tpu.memory_space<vmem>>, %arg3: memref<8x32xf32, #tpu.memory_space<vmem>>, %arg4: memref<8x1xf32, #tpu.memory_space<vmem>>, %arg5: memref<1x8xf32, #tpu.memory_space<vmem>>, %arg6: memref<8x1xi32, #tpu.memory_space<vmem>>, %arg7: memref<1x8xi32, #tpu.memory_space<vmem>>, %arg8: memref<8x1xf32, #tpu.memory_space<vmem>>, %arg9: memref<8x1xf32, #tpu.memory_space<vmem>>, %arg10: memref<8x1xf32, #tpu.memory_space<vmem>>, %arg11: memref<8x1xf32, #tpu.memory_space<vmem>>) attributes {dimension_semantics = [#tpu.dimension_semantics<parallel>, #tpu.dimension_semantics<arbitrary>], iteration_bounds = array<i64: 1, 1>, scalar_prefetch = 0 : i64, scratch_operands = 2 : i64, tpu.core_type = #tpu.core_type<tc>, window_params = [{transform_indices = @transform_0, window_bounds = array<i64: 8, 32>}, {transform_indices = @transform_1, window_bounds = array<i64: 8, 32>}, {transform_indices = @transform_2, window_bounds = array<i64: 8, 1>}, {transform_indices = @transform_3, window_bounds = array<i64: 1, 8>}, {transform_indices = @transform_4, window_bounds = array<i64: 8, 1>}, {transform_indices = @transform_5, window_bounds = array<i64: 1, 8>}, {transform_indices = @transform_6, window_bounds = array<i64: 8, 1>}, {transform_indices = @transform_7, window_bounds = array<i64: 8, 1>}]} {
    %c0 = arith.constant 0 : index
    %c0_0 = arith.constant 0 : index
    %0 = vector.load %arg6[%c0, %c0_0] : memref<8x1xi32, #tpu.memory_space<vmem>>, vector<8x1xi32>
    %c0_1 = arith.constant 0 : index
    %c0_2 = arith.constant 0 : index
    %1 = vector.load %arg7[%c0_1, %c0_2] : memref<1x8xi32, #tpu.memory_space<vmem>>, vector<1x8xi32>
    %c0_3 = arith.constant 0 : index
    %c0_4 = arith.constant 0 : index
    %2 = vector.load %arg2[%c0_3, %c0_4] : memref<8x32xf32, #tpu.memory_space<vmem>>, vector<8x32xf32>
    %c0_5 = arith.constant 0 : index
    %c0_6 = arith.constant 0 : index
    %3 = vector.load %arg3[%c0_5, %c0_6] : memref<8x32xf32, #tpu.memory_space<vmem>>, vector<8x32xf32>
    %cst = arith.constant dense<0.000000e+00> : vector<8x8xf32>
    %4 = tpu.matmul %2, %3, %cst {dimension_numbers = #tpu.dot_dimension_numbers<[1], [1], [0], [0], [0, 0, 1, 0], [], []>} : vector<8x32xf32>, vector<8x32xf32>, vector<8x8xf32> -> vector<8x8xf32>
    %c0_7 = arith.constant 0 : index
    %c0_8 = arith.constant 0 : index
    %5 = vector.load %arg5[%c0_7, %c0_8] : memref<1x8xf32, #tpu.memory_space<vmem>>, vector<1x8xf32>
    %cst_9 = arith.constant 5.000000e-01 : f32
    %6 = vector.broadcast %cst_9 : f32 to vector<1x8xf32>
    %7 = arith.mulf %6, %5 : vector<1x8xf32>
    %8 = vector.broadcast %7 : vector<1x8xf32> to vector<8x8xf32>
    %9 = arith.subf %8, %4 : vector<8x8xf32>
    %c8_i32 = arith.constant 8 : i32
    %10 = arith.muli %arg1, %c8_i32 : i32
    %11 = tpu.iota {dimensions = array<i32: 1>} : vector<1x8xi32>
    %12 = vector.broadcast %10 : i32 to vector<1x8xi32>
    %13 = arith.addi %12, %11 : vector<1x8xi32>
    %c8_i32_10 = arith.constant 8 : i32
    %14 = vector.broadcast %c8_i32_10 : i32 to vector<1x8xi32>
    %15 = arith.cmpi slt, %13, %14 : vector<1x8xi32>
    %16 = vector.broadcast %0 : vector<8x1xi32> to vector<8x8xi32>
    %17 = vector.broadcast %1 : vector<1x8xi32> to vector<8x8xi32>
    %18 = arith.cmpi eq, %16, %17 : vector<8x8xi32>
    %19 = vector.broadcast %15 : vector<1x8xi1> to vector<8x8xi1>
    %20 = arith.andi %18, %19 : vector<8x8xi1>
    %cst_11 = arith.constant dense<true> : vector<8x8xi1>
    %21 = arith.xori %18, %cst_11 : vector<8x8xi1>
    %22 = vector.broadcast %15 : vector<1x8xi1> to vector<8x8xi1>
    %23 = arith.andi %21, %22 : vector<8x8xi1>
    %c0_i32 = arith.constant 0 : i32
    %24 = arith.cmpi eq, %arg1, %c0_i32 : i32
    %25 = arith.extui %24 : i1 to i32
    %c0_i32_12 = arith.constant 0 : i32
    %26 = arith.cmpi ne, %25, %c0_i32_12 : i32
    scf.if %26 {
      %cst_27 = arith.constant -1.000000e+30 : f32
      %44 = vector.broadcast %cst_27 : f32 to vector<8x1xf32>
      %c0_28 = arith.constant 0 : index
      %c0_29 = arith.constant 0 : index
      %45 = vector.load %arg10[%c0_28, %c0_29] : memref<8x1xf32, #tpu.memory_space<vmem>>, vector<8x1xf32>
      tpu.vector_store %arg10[%c0_28, %c0_29], %44 {strides = array<i32>} : memref<8x1xf32, #tpu.memory_space<vmem>>, vector<8x1xf32>,
      %cst_30 = arith.constant 1.000000e+30 : f32
      %46 = vector.broadcast %cst_30 : f32 to vector<8x1xf32>
      %c0_31 = arith.constant 0 : index
      %c0_32 = arith.constant 0 : index
      %47 = vector.load %arg11[%c0_31, %c0_32] : memref<8x1xf32, #tpu.memory_space<vmem>>, vector<8x1xf32>
      tpu.vector_store %arg11[%c0_31, %c0_32], %46 {strides = array<i32>} : memref<8x1xf32, #tpu.memory_space<vmem>>, vector<8x1xf32>,
      %c0_33 = arith.constant 0 : index
      %c0_34 = arith.constant 0 : index
      %48 = vector.load %arg2[%c0_33, %c0_34] : memref<8x32xf32, #tpu.memory_space<vmem>>, vector<8x32xf32>
      %cst_35 = arith.constant dense<0xFF800000> : vector<8xf32>
      %49 = vector.multi_reduction <maximumf>, %48, %cst_35 [1] : vector<8x32xf32> to vector<8xf32>
      %50 = vector.shape_cast %49 : vector<8xf32> to vector<8x1xf32>
      %51 = vector.broadcast %50 : vector<8x1xf32> to vector<8x32xf32>
      %52 = arith.subf %48, %51 : vector<8x32xf32>
      %53 = math.exp %52 : vector<8x32xf32>
      %cst_36 = arith.constant dense<0.000000e+00> : vector<8xf32>
      %54 = vector.multi_reduction <add>, %53, %cst_36 [1] : vector<8x32xf32> to vector<8xf32>
      %55 = vector.shape_cast %54 : vector<8xf32> to vector<8x1xf32>
      %56 = math.log %55 : vector<8x1xf32>
      %57 = arith.addf %56, %50 : vector<8x1xf32>
      %58 = tpu.iota {dimensions = array<i32: 1>} : vector<8x32xi32>
      %59 = vector.broadcast %0 : vector<8x1xi32> to vector<8x32xi32>
      %60 = arith.cmpi eq, %58, %59 : vector<8x32xi32>
      %cst_37 = arith.constant 0.000000e+00 : f32
      %61 = vector.broadcast %cst_37 : f32 to vector<8x32xf32>
      %62 = arith.select %60, %48, %61 : vector<8x32xi1>, vector<8x32xf32>
      %cst_38 = arith.constant dense<0.000000e+00> : vector<8xf32>
      %63 = vector.multi_reduction <add>, %62, %cst_38 [1] : vector<8x32xf32> to vector<8xf32>
      %64 = vector.shape_cast %63 : vector<8xf32> to vector<8x1xf32>
      %65 = arith.subf %57, %64 : vector<8x1xf32>
      %c0_39 = arith.constant 0 : index
      %c0_40 = arith.constant 0 : index
      %66 = vector.load %arg8[%c0_39, %c0_40] : memref<8x1xf32, #tpu.memory_space<vmem>>, vector<8x1xf32>
      tpu.vector_store %arg8[%c0_39, %c0_40], %65 {strides = array<i32>} : memref<8x1xf32, #tpu.memory_space<vmem>>, vector<8x1xf32>,
    } else {
    }
    %c0_13 = arith.constant 0 : index
    %c0_14 = arith.constant 0 : index
    %27 = vector.load %arg10[%c0_13, %c0_14] : memref<8x1xf32, #tpu.memory_space<vmem>>, vector<8x1xf32>
    %cst_15 = arith.constant -1.000000e+30 : f32
    %28 = vector.broadcast %cst_15 : f32 to vector<8x8xf32>
    %29 = arith.select %20, %9, %28 : vector<8x8xi1>, vector<8x8xf32>
    %cst_16 = arith.constant dense<0xFF800000> : vector<8xf32>
    %30 = vector.multi_reduction <maximumf>, %29, %cst_16 [1] : vector<8x8xf32> to vector<8xf32>
    %31 = vector.shape_cast %30 : vector<8xf32> to vector<8x1xf32>
    %32 = arith.maximumf %27, %31 : vector<8x1xf32>
    %c0_17 = arith.constant 0 : index
    %c0_18 = arith.constant 0 : index
    %33 = vector.load %arg10[%c0_17, %c0_18] : memref<8x1xf32, #tpu.memory_space<vmem>>, vector<8x1xf32>
    tpu.vector_store %arg10[%c0_17, %c0_18], %32 {strides = array<i32>} : memref<8x1xf32, #tpu.memory_space<vmem>>, vector<8x1xf32>,
    %c0_19 = arith.constant 0 : index
    %c0_20 = arith.constant 0 : index
    %34 = vector.load %arg11[%c0_19, %c0_20] : memref<8x1xf32, #tpu.memory_space<vmem>>, vector<8x1xf32>
    %cst_21 = arith.constant 1.000000e+30 : f32
    %35 = vector.broadcast %cst_21 : f32 to vector<8x8xf32>
    %36 = arith.select %23, %9, %35 : vector<8x8xi1>, vector<8x8xf32>
    %cst_22 = arith.constant dense<0x7F800000> : vector<8xf32>
    %37 = vector.multi_reduction <minimumf>, %36, %cst_22 [1] : vector<8x8xf32> to vector<8xf32>
    %38 = vector.shape_cast %37 : vector<8xf32> to vector<8x1xf32>
    %39 = arith.minimumf %34, %38 : vector<8x1xf32>
    %c0_23 = arith.constant 0 : index
    %c0_24 = arith.constant 0 : index
    %40 = vector.load %arg11[%c0_23, %c0_24] : memref<8x1xf32, #tpu.memory_space<vmem>>, vector<8x1xf32>
    tpu.vector_store %arg11[%c0_23, %c0_24], %39 {strides = array<i32>} : memref<8x1xf32, #tpu.memory_space<vmem>>, vector<8x1xf32>,
    %c0_i32_25 = arith.constant 0 : i32
    %41 = arith.cmpi eq, %arg1, %c0_i32_25 : i32
    %42 = arith.extui %41 : i1 to i32
    %c0_i32_26 = arith.constant 0 : i32
    %43 = arith.cmpi ne, %42, %c0_i32_26 : i32
    scf.if %43 {
      %c0_27 = arith.constant 0 : index
      %c0_28 = arith.constant 0 : index
      %44 = vector.load %arg4[%c0_27, %c0_28] : memref<8x1xf32, #tpu.memory_space<vmem>>, vector<8x1xf32>
      %c0_29 = arith.constant 0 : index
      %c0_30 = arith.constant 0 : index
      %45 = vector.load %arg10[%c0_29, %c0_30] : memref<8x1xf32, #tpu.memory_space<vmem>>, vector<8x1xf32>
      %cst_31 = arith.constant 2.000000e+00 : f32
      %46 = vector.broadcast %cst_31 : f32 to vector<8x1xf32>
      %47 = arith.mulf %46, %45 : vector<8x1xf32>
      %48 = arith.addf %44, %47 : vector<8x1xf32>
      %cst_32 = arith.constant 9.99999996E-13 : f32
      %49 = vector.broadcast %cst_32 : f32 to vector<8x1xf32>
      %50 = arith.maximumf %48, %49 : vector<8x1xf32>
      %51 = math.sqrt %50 : vector<8x1xf32>
      %c0_33 = arith.constant 0 : index
      %c0_34 = arith.constant 0 : index
      %52 = vector.load %arg11[%c0_33, %c0_34] : memref<8x1xf32, #tpu.memory_space<vmem>>, vector<8x1xf32>
      %cst_35 = arith.constant 2.000000e+00 : f32
      %53 = vector.broadcast %cst_35 : f32 to vector<8x1xf32>
      %54 = arith.mulf %53, %52 : vector<8x1xf32>
      %55 = arith.addf %44, %54 : vector<8x1xf32>
      %cst_36 = arith.constant 9.99999996E-13 : f32
      %56 = vector.broadcast %cst_36 : f32 to vector<8x1xf32>
      %57 = arith.maximumf %55, %56 : vector<8x1xf32>
      %58 = math.sqrt %57 : vector<8x1xf32>
      %59 = arith.subf %51, %58 : vector<8x1xf32>
      %cst_37 = arith.constant 3.000000e-01 : f32
      %60 = vector.broadcast %cst_37 : f32 to vector<8x1xf32>
      %61 = arith.addf %59, %60 : vector<8x1xf32>
      %cst_38 = arith.constant 0.000000e+00 : f32
      %62 = vector.broadcast %cst_38 : f32 to vector<8x1xf32>
      %63 = arith.maximumf %61, %62 : vector<8x1xf32>
      %c0_39 = arith.constant 0 : index
      %c0_40 = arith.constant 0 : index
      %64 = vector.load %arg9[%c0_39, %c0_40] : memref<8x1xf32, #tpu.memory_space<vmem>>, vector<8x1xf32>
      tpu.vector_store %arg9[%c0_39, %c0_40], %63 {strides = array<i32>} : memref<8x1xf32, #tpu.memory_space<vmem>>, vector<8x1xf32>,
    } else {
    }
    return
  }
  func.func @transform_0(%arg0: i32, %arg1: i32) -> (i32, i32) {
    %c0_i32 = arith.constant 0 : i32
    %c0_i32_0 = arith.constant 0 : i32
    return %arg0, %c0_i32 : i32, i32
  }
  func.func @transform_1(%arg0: i32, %arg1: i32) -> (i32, i32) {
    %c0_i32 = arith.constant 0 : i32
    %c0_i32_0 = arith.constant 0 : i32
    return %arg1, %c0_i32 : i32, i32
  }
  func.func @transform_2(%arg0: i32, %arg1: i32) -> (i32, i32) {
    %c0_i32 = arith.constant 0 : i32
    %c0_i32_0 = arith.constant 0 : i32
    return %arg0, %c0_i32 : i32, i32
  }
  func.func @transform_3(%arg0: i32, %arg1: i32) -> (i32, i32) {
    %c0_i32 = arith.constant 0 : i32
    %c0_i32_0 = arith.constant 0 : i32
    return %c0_i32, %arg1 : i32, i32
  }
  func.func @transform_4(%arg0: i32, %arg1: i32) -> (i32, i32) {
    %c0_i32 = arith.constant 0 : i32
    %c0_i32_0 = arith.constant 0 : i32
    return %arg0, %c0_i32 : i32, i32
  }
  func.func @transform_5(%arg0: i32, %arg1: i32) -> (i32, i32) {
    %c0_i32 = arith.constant 0 : i32
    %c0_i32_0 = arith.constant 0 : i32
    return %c0_i32, %arg1 : i32, i32
  }
  func.func @transform_6(%arg0: i32, %arg1: i32) -> (i32, i32) {
    %c0_i32 = arith.constant 0 : i32
    %c0_i32_0 = arith.constant 0 : i32
    return %arg0, %c0_i32 : i32, i32
  }
  func.func @transform_7(%arg0: i32, %arg1: i32) -> (i32, i32) {
    %c0_i32 = arith.constant 0 : i32
    %c0_i32_0 = arith.constant 0 : i32
    return %arg0, %c0_i32 : i32, i32
  }
}

</mosaic_0001>

<bundles_post_ra>
// kernel: tpu_custom_call.1
= control target key start
LH: loop header
LB: loop body
LE: loop exit
PB: predicated region body
PF: predicated region fallthrough
CT: control target
= control target key end

     0   :  { %vm29_vm0 = vcmask 261120   ;;  %v240_v0 = vmov 0.0   ;;  %vm241_vm1 = vmmov 0   ;;  %v242_v4 = vmov 0   ;;  %s325_s1 = inlined_call_operand.vmem [shape: f32[8,32], index: 1, kind: input, shape index: {}]   ;;  %s326_s0 = inlined_call_operand.vmem [shape: f32[8,32], index: 0, kind: input, shape index: {}]   ;;  %s327_s4 = inlined_call_operand.vmem [shape: s32[8,1], index: 4, kind: input, shape index: {}]   ;;  %s328_s3 = inlined_call_operand.vmem [shape: f32[1,8], index: 3, kind: input, shape index: {}]   ;;  %s329_s5 = inlined_call_operand.vmem [shape: s32[1,8], index: 5, kind: input, shape index: {}]   ;;  %s330_s2 = inlined_call_operand.vmem [shape: f32[8,1], index: 2, kind: input, shape index: {}]   ;;  %s331_s6 = inlined_call_operand.vmem [shape: f32[8,1], index: 6, kind: output, shape index: {0}]   ;;  %s332_s7 = inlined_call_operand.vmem [shape: f32[8,1], index: 7, kind: output, shape index: {1}]  }
   0x1   :  { %220 = vmatprep.subr.mxu0 %v240_v0  ;;  %v28_v1 = vld [vmem:[%s325_s1] sm:$0xff]  ;;  %222 = vmatprep.mubr.msk.f32.mxu0 %vm241_vm1, %v240_v0  ;;  %vm138_vm2 = vcmask 7168   ;;  %v243_v6 = vmov -1e+30   ;;  %v109_v9 = vlaneseq  ;;  %vm244_vm5 = vmmov 1  }
   0x2   :  { %v25_v2 = vld [vmem:[%s327_s4] sm:$0xff]  ;;  %221 = vmatpush3.xpose.msk.msra.mxu0 %vm29_vm0, %v28_v1  ;;  %231 = vset.pattern.permute.xlu0 %v242_v4  ;;  %139 = vst.msk [vmem:[#allocation2] sm:$0xff] %vm138_vm2, %v243_v6  ;;  %vm163_vm7 = vcmask 64512   ;;  %v245_v29 = vmov 1e+30  }
   0x3   :  { %v27_v3 = vld [vmem:[%s326_s0] sm:$0xff]  ;;  %122 = vperm.xlu0 %231, %v25_v2   ;;  %v110_v11 = vshrl.u32 %v109_v9, 7  ;;  %v117_v17 = vand.u32 127, %v109_v9  ;;  %140 = vst.msk [vmem:[#allocation3] sm:$0xff] %vm138_vm2, %v245_v29 }
   0x4   :  { %v142_v5 = vsel %vm29_vm0, %v27_v3, -inf  ;;  %v106_v12 = vld [vmem:[%s328_s3] sm:$0x1] }
   0x5   :  { %223 = vmatmul.mubr.msk.f32.vlgmr.msra.gmra.mrb[0].mxu0 %vm29_vm0, %v27_v3  ;;  %v107_v14 = vmul.f32 0.5, %v106_v12  ;;  %v111_v15 = vsub.s32 0, %v110_v11  ;;  %v217_v16 = vld [vmem:[%s329_s5] ss:$0 sm:$0xff]  ;;  %vm120_vm4 = vcmp.lt.s32.totalorder %v117_v17, 8 }
   0x6   :  { %v180_v38 = vld [vmem:[%s330_s2] sm:$0xff] }
   0x7   :  { %v112_v18 = vrot.slane %v107_v14, %v111_v15 }
   0x9   :  { %v161_v31 = vld [vmem:[#allocation2] sm:$0xff] }
   0xa   :  { %v170_v34 = vld [vmem:[#allocation3] sm:$0xff] }
  0x22   :  { %143 = vmax.xlane.f32.xlu0 %v142_v5 }
  0x82   :  { %v123_v7 = vpop.permute.xlu0 %122 }
  0x83   :  { %vm128_vm3 = vcmp.eq.s32.totalorder %v123_v7, %v217_v16  ;;  %vm154_vm10 = vcmp.eq.s32.totalorder %v117_v17, %v123_v7 }
  0x84   :  { %vm132_vm6 = vmxor %vm128_vm3, %vm244_vm5  ;;  %v155_v28 = vsel %vm154_vm10, %v27_v3, 0.0 }
  0x85   :  { %vm131_vm8 = vmand %vm128_vm3, %vm120_vm4  ;;  %v156_v30 = vsel %vm29_vm0, %v155_v28, 0.0 }
  0x86   :  { %vm133_vm9 = vmand %vm132_vm6, %vm120_vm4 }
  0xaf   :  { %v299_v8 = vpop.xlane.xlu0 %143 }
  0xb0   :  { %v145_v10 = vsub.f32 %v27_v3, %v299_v8 }
  0xb2   :  { %v146_v13 = vmul.f32 1.442695, %v145_v10 }
  0xb4   :  { %232 = vpow2.f32 %v146_v13 }
  0xbe   :  { %v233_v25 = vpop.eup %232 }
  0xbf   :  { %v148_v27 = vsel %vm29_vm0, %v233_v25, 0.0 }
  0xd8   :  { %v102_v19 = vpop.f32.mrb[0].mxu0 }
  0xd9   :  { %v114_v20 = vsub.f32 %v112_v18, %v102_v19  ;;  %v224_v21 = vpop.f32.mrb[1].mxu0 }
  0xdb   :  { %v162_v22 = vsel %vm131_vm8, %v114_v20, -1e+30  ;;  %v171_v24 = vsel %vm133_vm9, %v114_v20, 1e+30 }
  0xdc   :  { %v164_v23 = vsel %vm163_vm7, %v162_v22, -inf  ;;  %v172_v26 = vsel %vm163_vm7, %v171_v24, inf }
  0xdd   :  { %165 = vmax.xlane.f32.xlu1 %v164_v23 }
  0xe1   :  { %173 = vmin.xlane.f32.xlu1 %v172_v26 }
  0xe5   :  { %149 = vadd.xlane.f32.xlu1 %v148_v27 }
  0xe9   :  { %157 = vadd.xlane.f32.xlu1 %v156_v30 }
 0x16a   :  { %v166_v32 = vpop.xlane.xlu1 %165 }
 0x16b   :  { %v167_v33 = vmax.f32 %v161_v31, %v166_v32 }
 0x16d   :  { %169 = vst.msk [vmem:[#allocation2] sm:$0xff] %vm138_vm2, %v167_v33 }
 0x16e   :  { %v174_v35 = vpop.xlane.xlu1 %173 }
 0x16f   :  { %v175_v36 = vmin.f32 %v170_v34, %v174_v35 }
 0x171   :  { %176 = vst.msk [vmem:[#allocation3] sm:$0xff] %vm138_vm2, %v175_v36 }
 0x172   :  { %v150_v37 = vpop.xlane.xlu1 %149 }
 0x173   :  { %234 = vlog2.f32 %v150_v37 }
 0x174   :  { %v181_v39 = vld [vmem:[#allocation2] sm:$0xff] }
 0x175   :  { %v182_v40 = vmul.f32 2.0, %v181_v39 }
 0x176   :  { %v158_v50 = vpop.xlane.xlu1 %157 }
 0x177   :  { %v183_v41 = vadd.f32 %v182_v40, %v180_v38 }
 0x178   :  { %v192_v42 = vld [vmem:[#allocation3] sm:$0xff] }
 0x179   :  { %v184_v43 = vmax.f32 %v183_v41, 1e-12  ;;  %v193_v44 = vmul.f32 2.0, %v192_v42 }
 0x17b   :  { %236 = vrsqrt.f32 %v184_v43  ;;  %v194_v45 = vadd.f32 %v193_v44, %v180_v38  ;;  %vm187_vm11 = vcmp.eq.f32.partialorder %v184_v43, inf  ;;  %v190_v57 = vand.u32 2147483648, %v184_v43 }
 0x17c   :  { %vm189_vm13 = vcmp.eq.f32.partialorder %v184_v43, 0.0 }
 0x17d   :  { %v235_v46 = vpop.eup %234  ;;  %v195_v47 = vmax.f32 %v194_v45, 1e-12 }
 0x17e   :  { %v152_v48 = vmul.f32 0.6931472, %v235_v46 }
 0x17f   :  { %238 = vrsqrt.f32 %v195_v47  ;;  %vm198_vm12 = vcmp.eq.f32.partialorder %v195_v47, inf  ;;  %v201_v58 = vand.u32 2147483648, %v195_v47  ;;  %vm200_vm14 = vcmp.eq.f32.partialorder %v195_v47, 0.0 }
 0x180   :  { %v153_v49 = vadd.f32 %v152_v48, %v299_v8 }
 0x182   :  { %v159_v51 = vsub.f32 %v153_v49, %v158_v50 }
 0x184   :  { %160 = vst.msk [vmem:[%s331_s6] sm:$0xff] %vm138_vm2, %v159_v51 }
 0x185   :  { %v237_v52 = vpop.eup %236 }
 0x186   :  { %v186_v53 = vmul.f32 %v237_v52, %v184_v43 }
 0x188   :  { %v188_v55 = vsel %vm187_vm11, %v184_v43, %v186_v53 }
 0x189   :  { %v239_v54 = vpop.eup %238  ;;  %v191_v60 = vsel %vm189_vm13, %v190_v57, %v188_v55 }
 0x18a   :  { %v197_v56 = vmul.f32 %v239_v54, %v195_v47 }
 0x18c   :  { %v199_v59 = vsel %vm198_vm12, %v195_v47, %v197_v56 }
 0x18d   :  { %v202_v61 = vsel %vm200_vm14, %v201_v58, %v199_v59 }
 0x18e   :  { %v203_v62 = vsub.f32 %v191_v60, %v202_v61 }
 0x190   :  { %v204_v63 = vadd.f32 0.3, %v203_v62 }
 0x192   :  { %v205_v0 = vmax.f32 %v204_v63, 0.0 }
 0x194   :  { %206 = vst.msk [vmem:[%s332_s7] sm:$0xff] %vm138_vm2, %v205_v0 }

</bundles_post_ra>
